<compile_context>
chip_gen: v7x
topology: tpu7x:2x2x1
jax: 0.10.0
libtpu: 0.0.40
codegen_flags: <defaults>
</compile_context>

<pallas_src>
import functools
import math

import jax
import jax.numpy as jnp
from jax.experimental import pallas as pl
from jax.experimental.pallas import tpu as pltpu

_VMEM = pltpu.MemorySpace.VMEM
_VMEM_LIMIT = 32 * 1024 * 1024
_TM, _TN, _TK = 512, 512, 1024
_TA = 1024   # affine (folded-BN) row tile


def _round_up(x, m):
    return (x + m - 1) // m * m


def _pick_tile(padded, align, max_tile):
    """Largest multiple of `align` <= max_tile that divides `padded`."""
    if padded <= max_tile:
        return padded
    best = align
    t = align
    while t <= max_tile:
        if padded % t == 0:
            best = t
        t += align
    return best


# ----------------------------- Pallas kernels --------------------------------

def _mm_bias_kernel(a_ref, b_ref, bias_ref, o_ref, acc_ref):
    @pl.when(pl.program_id(2) == 0)
    def _():
        acc_ref[...] = jnp.zeros_like(acc_ref)
    acc_ref[...] += jnp.dot(a_ref[...], b_ref[...],
                            preferred_element_type=jnp.float32)

    @pl.when(pl.program_id(2) == pl.num_programs(2) - 1)
    def _():
        o_ref[...] = (acc_ref[...] + bias_ref[...]).astype(o_ref.dtype)


def _mm_prelu_kernel(a_ref, b_ref, bias_ref, alpha_ref, o_ref, acc_ref):
    @pl.when(pl.program_id(2) == 0)
    def _():
        acc_ref[...] = jnp.zeros_like(acc_ref)
    acc_ref[...] += jnp.dot(a_ref[...], b_ref[...],
                            preferred_element_type=jnp.float32)

    @pl.when(pl.program_id(2) == pl.num_programs(2) - 1)
    def _():
        y = acc_ref[...] + bias_ref[...]
        o_ref[...] = jnp.where(y >= 0.0, y, alpha_ref[...] * y).astype(o_ref.dtype)


def _mm_res_kernel(a_ref, b_ref, bias_ref, res_ref, o_ref, acc_ref):
    @pl.when(pl.program_id(2) == 0)
    def _():
        acc_ref[...] = jnp.zeros_like(acc_ref)
    acc_ref[...] += jnp.dot(a_ref[...], b_ref[...],
                            preferred_element_type=jnp.float32)

    @pl.when(pl.program_id(2) == pl.num_programs(2) - 1)
    def _():
        y = acc_ref[...] + bias_ref[...] + res_ref[...].astype(jnp.float32)
        o_ref[...] = y.astype(o_ref.dtype)


def _affine_kernel(x_ref, s_ref, t_ref, o_ref):
    # eval-mode BatchNorm folded to per-channel scale/shift
    y = x_ref[...].astype(jnp.float32) * s_ref[...] + t_ref[...]
    o_ref[...] = y.astype(o_ref.dtype)


def _student_head_kernel(raw_ref, wat_ref, bat_ref, wg_ref, bg_ref, wac_ref, bac_ref,
                         idf_ref, age_ref):
    # age_features = raw @ W_at + b_at ; age_out = age_features @ W_ac + b_ac
    # id = normalize(raw - (age_features @ W_g + b_g))
    raw = raw_ref[...].astype(jnp.float32)
    af = jnp.dot(raw, wat_ref[...], preferred_element_type=jnp.float32) + bat_ref[...]
    age_ref[...] = jnp.sum(af * wac_ref[...], axis=-1, keepdims=True) + bac_ref[...]
    g = jnp.dot(af, wg_ref[...], preferred_element_type=jnp.float32) + bg_ref[...]
    d = raw - g
    inv = jax.lax.rsqrt(jnp.maximum(jnp.sum(d * d, axis=-1, keepdims=True), 1e-24))
    idf_ref[...] = d * inv


def _arcface_kernel(feat_ref, w_ref, lbl_ref, featn_ref, cos_ref, *, cos_m, sin_m, scale):
    # F.normalize(features) ; cos = feat_n @ normalize_cols(W) clamped to [-1,1]
    # cos(theta + m) applied at the label column (rows with label >= 0), then * s.
    f = feat_ref[...].astype(jnp.float32)
    fn = f * jax.lax.rsqrt(jnp.maximum(jnp.sum(f * f, axis=-1, keepdims=True), 1e-24))
    featn_ref[...] = fn
    w = w_ref[...].astype(jnp.float32)
    wn = w * jax.lax.rsqrt(jnp.maximum(jnp.sum(w * w, axis=0, keepdims=True), 1e-24))
    cos = jnp.clip(jnp.dot(fn, wn, preferred_element_type=jnp.float32), -1.0, 1.0)
    sin = jnp.sqrt(jnp.maximum(1.0 - cos * cos, 0.0))
    phi = cos * cos_m - sin * sin_m          # == cos(acos(cos) + m)
    lbl = lbl_ref[...]                       # (B, 1) int32
    cols = jax.lax.broadcasted_iota(jnp.int32, cos.shape, 1)
    hit = jnp.logical_and(cols == lbl, lbl >= 0)
    cos_ref[...] = scale * jnp.where(hit, phi, cos)


# ------------------------- cached pallas_call builders -----------------------

_MM_KERNELS = {"bias": _mm_bias_kernel, "prelu": _mm_prelu_kernel, "res": _mm_res_kernel}


@functools.lru_cache(maxsize=None)
def _mm_call(mode, mp, kp, np_, tm, tk, tn, out_dtype_name):
    grid = (mp // tm, np_ // tn, kp // tk)
    in_specs = [
        pl.BlockSpec((tm, tk), lambda i, j, k: (i, k)),
        pl.BlockSpec((tk, tn), lambda i, j, k: (k, j)),
        pl.BlockSpec((1, tn), lambda i, j, k: (0, j)),
    ]
    if mode == "prelu":
        in_specs.append(pl.BlockSpec((1, tn), lambda i, j, k: (0, j)))
    elif mode == "res":
        in_specs.append(pl.BlockSpec((tm, tn), lambda i, j, k: (i, j)))
    return jax.jit(pl.pallas_call(
        _MM_KERNELS[mode],
        out_shape=jax.ShapeDtypeStruct((mp, np_), jnp.dtype(out_dtype_name)),
        grid_spec=pltpu.PrefetchScalarGridSpec(
            num_scalar_prefetch=0, grid=grid,
            in_specs=in_specs,
            out_specs=pl.BlockSpec((tm, tn), lambda i, j, k: (i, j)),
            scratch_shapes=[pltpu.VMEM((tm, tn), jnp.float32)]),
        compiler_params=pltpu.CompilerParams(
            dimension_semantics=("parallel", "parallel", "arbitrary"),
            vmem_limit_bytes=_VMEM_LIMIT)))


@functools.lru_cache(maxsize=None)
def _affine_call(mp, c, tm, out_dtype_name):
    return jax.jit(pl.pallas_call(
        _affine_kernel,
        out_shape=jax.ShapeDtypeStruct((mp, c), jnp.dtype(out_dtype_name)),
        grid_spec=pltpu.PrefetchScalarGridSpec(
            num_scalar_prefetch=0, grid=(mp // tm,),
            in_specs=[pl.BlockSpec((tm, c), lambda i: (i, 0)),
                      pl.BlockSpec((1, c), lambda i: (0, 0)),
                      pl.BlockSpec((1, c), lambda i: (0, 0))],
            out_specs=pl.BlockSpec((tm, c), lambda i: (i, 0))),
        compiler_params=pltpu.CompilerParams(
            dimension_semantics=("parallel",),
            vmem_limit_bytes=_VMEM_LIMIT)))


@functools.lru_cache(maxsize=None)
def _student_head_call(b, d):
    return jax.jit(pl.pallas_call(
        _student_head_kernel,
        out_shape=(jax.ShapeDtypeStruct((b, d), jnp.float32),
                   jax.ShapeDtypeStruct((b, 1), jnp.float32)),
        in_specs=[pl.BlockSpec(memory_space=_VMEM)] * 7,
        out_specs=(pl.BlockSpec(memory_space=_VMEM),) * 2,
        compiler_params=pltpu.CompilerParams(vmem_limit_bytes=_VMEM_LIMIT)))


@functools.lru_cache(maxsize=None)
def _arcface_call(b, d, npad, cos_m, sin_m, scale):
    kernel = functools.partial(_arcface_kernel, cos_m=cos_m, sin_m=sin_m, scale=scale)
    return jax.jit(pl.pallas_call(
        kernel,
        out_shape=(jax.ShapeDtypeStruct((b, d), jnp.float32),
                   jax.ShapeDtypeStruct((b, npad), jnp.float32)),
        in_specs=[pl.BlockSpec(memory_space=_VMEM)] * 3,
        out_specs=(pl.BlockSpec(memory_space=_VMEM),) * 2,
        compiler_params=pltpu.CompilerParams(vmem_limit_bytes=_VMEM_LIMIT)))


# ------------------------------ op wrappers -----------------------------------

def fused_matmul(a, w, bias, *, mode="bias", alpha=None, res=None,
                 out_dtype=jnp.bfloat16):
    """y = a @ w + bias, with optional PReLU or residual-add epilogue.

    a: (M, K) activations; w: (K, N) pre-folded weights (bf16); bias/alpha: (N,) f32;
    res: (M, N).  M / K / N are padded to tile multiples and the output is sliced back.
    """
    m, k = a.shape
    n = w.shape[1]
    mp, kp, np_ = _round_up(m, 8), _round_up(k, 128), _round_up(n, 128)
    tm = _pick_tile(mp, 8, _TM)
    tk = _pick_tile(kp, 128, _TK)
    tn = _pick_tile(np_, 128, _TN)

    a_p = jnp.pad(a.astype(jnp.bfloat16), ((0, mp - m), (0, kp - k)))
    w_p = jnp.pad(w.astype(jnp.bfloat16), ((0, kp - k), (0, np_ - n)))
    b_p = jnp.pad(bias.astype(jnp.float32).reshape(1, n), ((0, 0), (0, np_ - n)))
    args = [a_p, w_p, b_p]
    if mode == "prelu":
        args.append(jnp.pad(alpha.astype(jnp.float32).reshape(1, n),
                            ((0, 0), (0, np_ - n))))
    elif mode == "res":
        args.append(jnp.pad(res.astype(jnp.bfloat16), ((0, mp - m), (0, np_ - n))))

    out = _mm_call(mode, mp, kp, np_, tm, tk, tn, jnp.dtype(out_dtype).name)(*args)
    return out[:m, :n]


def affine(x2d, scale, shift, out_dtype=jnp.bfloat16):
    m, c = x2d.shape
    mp = _round_up(m, 8)
    tm = _pick_tile(mp, 8, _TA)
    xp = jnp.pad(x2d, ((0, mp - m), (0, 0)))
    out = _affine_call(mp, c, tm, jnp.dtype(out_dtype).name)(
        xp, scale.astype(jnp.float32).reshape(1, c),
        shift.astype(jnp.float32).reshape(1, c))
    return out[:m]


def _im2col(x, k, stride, padding):
    n, h, w, c = x.shape
    if padding:
        x = jnp.pad(x, ((0, 0), (padding, padding), (padding, padding), (0, 0)))
    ho = (h + 2 * padding - k) // stride + 1
    wo = (w + 2 * padding - k) // stride + 1
    cols = []
    for i in range(k):
        for j in range(k):
            cols.append(x[:, i:i + stride * ho:stride, j:j + stride * wo:stride, :])
    col = jnp.concatenate(cols, axis=-1).reshape(n * ho * wo, k * k * c)
    return col, ho, wo


# --------------------------- backbone (iresnet100) ----------------------------

@jax.jit
def _stem_fwd(p, x):
    n = x.shape[0]
    col, ho, wo = _im2col(x, 3, 1, 1)
    y = fused_matmul(col, p["w"], p["b"], mode="prelu", alpha=p["alpha"])
    return y.reshape(n, ho, wo, p["w"].shape[1])


@functools.partial(jax.jit, static_argnames=("stride",))
def _block_fwd(p, x, *, stride):
    n, h, w, cin = x.shape
    planes = p["w1"].shape[1]
    h1 = affine(x.reshape(n * h * w, cin), p["bn1_s"], p["bn1_t"]).reshape(n, h, w, cin)
    col1, ho1, wo1 = _im2col(h1, 3, 1, 1)
    y1 = fused_matmul(col1, p["w1"], p["b1"], mode="prelu", alpha=p["alpha"])
    y1 = y1.reshape(n, ho1, wo1, planes)
    col2, ho2, wo2 = _im2col(y1, 3, stride, 1)
    if "wd" in p:
        cold, _, _ = _im2col(x, 1, stride, 0)
        idn = fused_matmul(cold, p["wd"], p["bd"], mode="bias")
    else:
        idn = x.reshape(n * h * w, cin)
    out = fused_matmul(col2, p["w2"], p["b2"], mode="res", res=idn)
    return out.reshape(n, ho2, wo2, planes)


@jax.jit
def _tail_fwd(p, x):
    # bn2 + flatten + dropout(p=0) + fc + features-BN1d, all pre-folded into fc.
    n, h, w, c = x.shape
    flat = x.reshape(n, h * w * c)
    return fused_matmul(flat, p["fc_w"], p["fc_b"], mode="bias", out_dtype=jnp.float32)


def _backbone_forward(bp, x_nhwc):
    x = _stem_fwd(bp["stem"], x_nhwc)
    for layer in bp["layers"]:
        for bi, blk in enumerate(layer):
            x = _block_fwd(blk, x, stride=2 if bi == 0 else 1)
    return _tail_fwd(bp["tail"], x)        # (N, 512) f32


# ------------------------------ full forward ----------------------------------

def adatrans_forward(params, x_nchw, labels, *, margin=0.1, scale=64.0):
    x = jnp.transpose(x_nchw, (0, 2, 3, 1)).astype(jnp.bfloat16)   # NCHW -> NHWC once
    raw_t = _backbone_forward(params["teacher"]["backbone"], x)
    raw_s = _backbone_forward(params["student"]["backbone"], x)

    b, d = raw_t.shape
    nc = params["num_classes"]
    lbl = labels.reshape(b, 1).astype(jnp.int32)
    w_t = params["teacher"]["head_w"]
    w_s = params["student"]["head_w"]
    arc = _arcface_call(b, d, w_t.shape[1],
                        float(math.cos(margin)), float(math.sin(margin)), float(scale))

    # teacher: normalize + ElasticArcFace head
    id_t, cos_t = arc(raw_t, w_t, lbl)
    # student: age_trans / age_classify / g / normalize, then ElasticArcFace head
    ex = params["student"]["extras"]
    id_s, age_out = _student_head_call(b, d)(
        raw_s, ex["w_at"], ex["b_at"], ex["w_g"], ex["b_g"], ex["w_ac"], ex["b_ac"])
    _, cos_s = arc(id_s, w_s, lbl)

    return id_s, id_t, cos_s[:, :nc], cos_t[:, :nc], age_out


# ----------------------------- parameter init ---------------------------------

class _KeyGen:
    def __init__(self, key):
        self._key, self._i = key, 0

    def __call__(self):
        self._i += 1
        return jax.random.fold_in(self._key, self._i)


def _conv_w(key, k, cin, cout):
    std = (2.0 / (k * k * cin)) ** 0.5
    return std * jax.random.normal(key, (k * k * cin, cout), jnp.float32)


def _bn(key, c):
    k1, k2, k3, k4 = jax.random.split(key, 4)
    return dict(
        gamma=1.0 + 0.05 * jax.random.normal(k1, (c,), jnp.float32),
        beta=0.05 * jax.random.normal(k2, (c,), jnp.float32),
        mean=0.05 * jax.random.normal(k3, (c,), jnp.float32),
        var=jax.random.uniform(k4, (c,), jnp.float32, 0.8, 1.2))


def _bn_fold(bn, eps=1e-5):
    s = bn["gamma"] / jnp.sqrt(bn["var"] + eps)
    return s, bn["beta"] - bn["mean"] * s


def _prep_block(key, cin, planes, stride):
    kg = _KeyGen(key)
    bn1_s, bn1_t = _bn_fold(_bn(kg(), cin))
    w1 = _conv_w(kg(), 3, cin, planes)
    bn2_s, bn2_t = _bn_fold(_bn(kg(), planes))
    w2 = _conv_w(kg(), 3, planes, planes)
    bn3_s, bn3_t = _bn_fold(_bn(kg(), planes))
    p = dict(
        bn1_s=bn1_s, bn1_t=bn1_t,
        w1=(w1 * bn2_s[None, :]).astype(jnp.bfloat16), b1=bn2_t,
        alpha=jnp.full((planes,), 0.25, jnp.float32),
        w2=(w2 * bn3_s[None, :]).astype(jnp.bfloat16), b2=bn3_t)
    if stride != 1 or cin != planes:
        wd = _conv_w(kg(), 1, cin, planes)
        bnd_s, bnd_t = _bn_fold(_bn(kg(), planes))
        p["wd"] = (wd * bnd_s[None, :]).astype(jnp.bfloat16)
        p["bd"] = bnd_t
    return p


def _prep_backbone(key, image_hw):
    kg = _KeyGen(key)
    layers_cfg = [(64, 3), (128, 13), (256, 30), (512, 3)]      # iresnet100
    stem_w = _conv_w(kg(), 3, 3, 64)
    bn1_s, bn1_t = _bn_fold(_bn(kg(), 64))
    stem = dict(w=(stem_w * bn1_s[None, :]).astype(jnp.bfloat16), b=bn1_t,
                alpha=jnp.full((64,), 0.25, jnp.float32))
    layers, cin = [], 64
    for planes, nblocks in layers_cfg:
        blocks = []
        for bi in range(nblocks):
            blocks.append(_prep_block(kg(), cin, planes, 2 if bi == 0 else 1))
            cin = planes
        layers.append(blocks)
    # tail: bn2 + fc + features BN1d folded into one weight/bias pair
    bn2_s, bn2_t = _bn_fold(_bn(kg(), 512))
    fc_scale = (image_hw // 16) ** 2
    fc_in = 512 * fc_scale
    fc_w = 0.02 * jax.random.normal(kg(), (fc_in, 512), jnp.float32)
    fc_b = 0.02 * jax.random.normal(kg(), (512,), jnp.float32)
    row_s = jnp.tile(bn2_s, fc_scale)
    row_t = jnp.tile(bn2_t, fc_scale)
    w_fold = fc_w * row_s[:, None]
    b_fold = fc_b + row_t @ fc_w
    feat_bn = _bn(kg(), 512)
    feat_bn["gamma"] = jnp.ones((512,), jnp.float32)   # iresnet fixes features.weight=1
    fs, ft = _bn_fold(feat_bn)
    tail = dict(fc_w=(w_fold * fs[None, :]).astype(jnp.bfloat16),
                fc_b=fs * b_fold + ft)
    return dict(stem=stem, layers=layers, tail=tail)


def _prep_head(key, num_classes):
    npad = _round_up(num_classes, 128)      # lane-dense head, sliced after the kernel
    w = 0.01 * jax.random.normal(key, (512, num_classes), jnp.float32)
    return jnp.pad(w, ((0, 0), (0, npad - num_classes)))


def _prep_student_extras(key):
    kg = _KeyGen(key)

    def lin(fin, fout):
        kw, kb = jax.random.split(kg())
        bound = 1.0 / (fin ** 0.5)
        return (jax.random.uniform(kw, (fin, fout), jnp.float32, -bound, bound),
                jax.random.uniform(kb, (fout,), jnp.float32, -bound, bound))

    w_at, b_at = lin(512, 512)
    w_g, b_g = lin(512, 512)
    w_ac, b_ac = lin(512, 1)
    return dict(w_at=w_at, b_at=b_at.reshape(1, 512),
                w_g=w_g, b_g=b_g.reshape(1, 512),
                w_ac=w_ac.reshape(1, 512), b_ac=b_ac.reshape(1, 1))


def init_params(key, num_classes, image_hw):
    kt, ks, kht, khs, kse = jax.random.split(key, 5)
    return dict(
        num_classes=num_classes,
        teacher=dict(backbone=_prep_backbone(kt, image_hw),
                     head_w=_prep_head(kht, num_classes)),
        student=dict(backbone=_prep_backbone(ks, image_hw),
                     head_w=_prep_head(khs, num_classes),
                     extras=_prep_student_extras(kse)))


# ---------------------------------- main ---------------------------------------

if __name__ == "__main__":
    key = jax.random.PRNGKey(0)
    k_param, k_x = jax.random.split(key)

    num_classes = 10
    batch, image_hw = 2, 16      # small spatial (real ElasticFace uses 112x112)

    params = init_params(k_param, num_classes, image_hw)
    x = jax.random.normal(k_x, (batch, 3, image_hw, image_hw), jnp.float32)
    labels = jnp.arange(batch, dtype=jnp.int32)

    outs = adatrans_forward(params, x, labels, margin=0.1, scale=64.0)
    jax.block_until_ready(outs)

    id_features_s, id_features_t, id_class_s, id_class_t, age_out = outs
    assert id_features_s.shape == (batch, 512)
    assert id_features_t.shape == (batch, 512)
    assert id_class_s.shape == (batch, num_classes)
    assert id_class_t.shape == (batch, num_classes)
    assert age_out.shape == (batch, 1)
    for o in outs:
        assert bool(jnp.all(jnp.isfinite(o)))
    print("KERNEL_OK")
</pallas_src>

<mosaic_0001>
module attributes {stable_mosaic.version = 11 : i64} {
  func.func @_mm_prelu_kernel(%arg0: i32, %arg1: i32, %arg2: i32, %arg3: memref<512x128xbf16, #tpu.memory_space<vmem>>, %arg4: memref<128x128xbf16, #tpu.memory_space<vmem>>, %arg5: memref<1x128xf32, #tpu.memory_space<vmem>>, %arg6: memref<1x128xf32, #tpu.memory_space<vmem>>, %arg7: memref<512x128xbf16, #tpu.memory_space<vmem>>, %arg8: memref<512x128xf32, #tpu.memory_space<vmem>>) attributes {dimension_semantics = [#tpu.dimension_semantics<parallel>, #tpu.dimension_semantics<parallel>, #tpu.dimension_semantics<arbitrary>], iteration_bounds = array<i64: 1, 1, 1>, scalar_prefetch = 0 : i64, scratch_operands = 1 : i64, tpu.core_type = #tpu.core_type<tc>, window_params = [{transform_indices = @transform_0, window_bounds = array<i64: 512, 128>}, {transform_indices = @transform_1, window_bounds = array<i64: 128, 128>}, {transform_indices = @transform_2, window_bounds = array<i64: 1, 128>}, {transform_indices = @transform_3, window_bounds = array<i64: 1, 128>}, {transform_indices = @transform_4, window_bounds = array<i64: 512, 128>}]} {
    %c0_i32 = arith.constant 0 : i32
    %0 = arith.cmpi eq, %arg2, %c0_i32 : i32
    %1 = arith.extui %0 : i1 to i32
    %c0_i32_0 = arith.constant 0 : i32
    %2 = arith.cmpi ne, %1, %c0_i32_0 : i32
    scf.if %2 {
      %cst_10 = arith.constant 0.000000e+00 : f32
      %12 = vector.broadcast %cst_10 : f32 to vector<512x128xf32>
      %c0_11 = arith.constant 0 : index
      %c0_12 = arith.constant 0 : index
      %13 = vector.load %arg8[%c0_11, %c0_12] : memref<512x128xf32, #tpu.memory_space<vmem>>, vector<512x128xf32>
      tpu.vector_store %arg8[%c0_11, %c0_12], %12 {strides = array<i32>} : memref<512x128xf32, #tpu.memory_space<vmem>>, vector<512x128xf32>,
    } else {
    }
    %c0 = arith.constant 0 : index
    %c0_1 = arith.constant 0 : index
    %3 = vector.load %arg8[%c0, %c0_1] : memref<512x128xf32, #tpu.memory_space<vmem>>, vector<512x128xf32>
    %c0_2 = arith.constant 0 : index
    %c0_3 = arith.constant 0 : index
    %4 = vector.load %arg3[%c0_2, %c0_3] : memref<512x128xbf16, #tpu.memory_space<vmem>>, vector<512x128xbf16>
    %c0_4 = arith.constant 0 : index
    %c0_5 = arith.constant 0 : index
    %5 = vector.load %arg4[%c0_4, %c0_5] : memref<128x128xbf16, #tpu.memory_space<vmem>>, vector<128x128xbf16>
    %cst = arith.constant dense<0.000000e+00> : vector<512x128xf32>
    %6 = tpu.matmul %4, %5, %cst {dimension_numbers = #tpu.dot_dimension_numbers<[1], [0], [0], [1], [0, 0, 1, 1], [], []>} : vector<512x128xbf16>, vector<128x128xbf16>, vector<512x128xf32> -> vector<512x128xf32>
    %7 = arith.addf %3, %6 : vector<512x128xf32>
    %c0_6 = arith.constant 0 : index
    %c0_7 = arith.constant 0 : index
    %8 = vector.load %arg8[%c0_6, %c0_7] : memref<512x128xf32, #tpu.memory_space<vmem>>, vector<512x128xf32>
    tpu.vector_store %arg8[%c0_6, %c0_7], %7 {strides = array<i32>} : memref<512x128xf32, #tpu.memory_space<vmem>>, vector<512x128xf32>,
    %c0_i32_8 = arith.constant 0 : i32
    %9 = arith.cmpi eq, %arg2, %c0_i32_8 : i32
    %10 = arith.extui %9 : i1 to i32
    %c0_i32_9 = arith.constant 0 : i32
    %11 = arith.cmpi ne, %10, %c0_i32_9 : i32
    scf.if %11 {
      %c0_10 = arith.constant 0 : index
      %c0_11 = arith.constant 0 : index
      %12 = vector.load %arg8[%c0_10, %c0_11] : memref<512x128xf32, #tpu.memory_space<vmem>>, vector<512x128xf32>
      %c0_12 = arith.constant 0 : index
      %c0_13 = arith.constant 0 : index
      %13 = vector.load %arg5[%c0_12, %c0_13] : memref<1x128xf32, #tpu.memory_space<vmem>>, vector<1x128xf32>
      %14 = vector.broadcast %13 : vector<1x128xf32> to vector<512x128xf32>
      %15 = arith.addf %12, %14 : vector<512x128xf32>
      %cst_14 = arith.constant 0.000000e+00 : f32
      %16 = vector.broadcast %cst_14 : f32 to vector<512x128xf32>
      %17 = arith.cmpf oge, %15, %16 : vector<512x128xf32>
      %c0_15 = arith.constant 0 : index
      %c0_16 = arith.constant 0 : index
      %18 = vector.load %arg6[%c0_15, %c0_16] : memref<1x128xf32, #tpu.memory_space<vmem>>, vector<1x128xf32>
      %19 = vector.broadcast %18 : vector<1x128xf32> to vector<512x128xf32>
      %20 = arith.mulf %19, %15 : vector<512x128xf32>
      %21 = arith.select %17, %15, %20 : vector<512x128xi1>, vector<512x128xf32>
      %22 = arith.truncf %21 : vector<512x128xf32> to vector<512x128xbf16>
      %c0_17 = arith.constant 0 : index
      %c0_18 = arith.constant 0 : index
      %23 = vector.load %arg7[%c0_17, %c0_18] : memref<512x128xbf16, #tpu.memory_space<vmem>>, vector<512x128xbf16>
      tpu.vector_store %arg7[%c0_17, %c0_18], %22 {strides = array<i32>} : memref<512x128xbf16, #tpu.memory_space<vmem>>, vector<512x128xbf16>,
    } else {
    }
    return
  }
  func.func @transform_0(%arg0: i32, %arg1: i32, %arg2: i32) -> (i32, i32) {
    %c0_i32 = arith.constant 0 : i32
    return %arg0, %arg2 : i32, i32
  }
  func.func @transform_1(%arg0: i32, %arg1: i32, %arg2: i32) -> (i32, i32) {
    %c0_i32 = arith.constant 0 : i32
    return %arg2, %arg1 : i32, i32
  }
  func.func @transform_2(%arg0: i32, %arg1: i32, %arg2: i32) -> (i32, i32) {
    %c0_i32 = arith.constant 0 : i32
    %c0_i32_0 = arith.constant 0 : i32
    return %c0_i32, %arg1 : i32, i32
  }
  func.func @transform_3(%arg0: i32, %arg1: i32, %arg2: i32) -> (i32, i32) {
    %c0_i32 = arith.constant 0 : i32
    %c0_i32_0 = arith.constant 0 : i32
    return %c0_i32, %arg1 : i32, i32
  }
  func.func @transform_4(%arg0: i32, %arg1: i32, %arg2: i32) -> (i32, i32) {
    %c0_i32 = arith.constant 0 : i32
    return %arg0, %arg1 : i32, i32
  }
}

</mosaic_0001>

<bundles_post_ra>
// kernel: tpu_custom_call.1
= control target key start
LH: loop header
LB: loop body
LE: loop exit
PB: predicated region body
PF: predicated region fallthrough
CT: control target
= control target key end

     0   :  { %9 = vsyncpa [#allocation4], 0  ;;  %s2423_s0 = inlined_call_operand.hbm [shape: bf16[512,128], index: 0, kind: input, shape index: {}]   ;;  %s2424_s1 = inlined_call_operand.hbm [shape: bf16[128,128], index: 1, kind: input, shape index: {}]   ;;  %s2425_s2 = inlined_call_operand.vmem [shape: f32[1,128], index: 2, kind: input, shape index: {}]   ;;  %s2426_s3 = inlined_call_operand.vmem [shape: f32[1,128], index: 3, kind: input, shape index: {}]   ;;  %s2427_s4 = inlined_call_operand.hbm [shape: bf16[512,128], index: 4, kind: output, shape index: {}]  }
   0x1   :  { %10 = vsyncpa [#allocation7], 0 }
   0x2   :  { %11 = vsyncpa [#allocation5], 0  ;;  %s2205_s15 = smov [#allocation3]   ;;  %s2133_s19 = scalar_lea.hbm %s2423_s0, 4096 }
   0x3   :  { %s17_s16 = sshll.u32 %s2205_s15, 4  ;;  %p2134_p0 = scmp.ne.s32.totalorder %s2423_s0, %s2133_s19  ;;  %s18_s16 = int_to_ptr.vmem [resolvable:$true] %s17_s16 }
   0x4   :  { %p2137_p1 = scmp.lt.u32.totalorder %s2133_s19, %s2423_s0 }
   0x6   :  { %p2139_p2 = pnand %p2137_p1, %p2134_p0 }
   0x8   :  { %2142 = shalt.err (!%p2139_p2)
}
   0x9   :  { %s2143_s24 = scalar_lea.vmem %s18_s16, 4096  ;;  %p2148_p4 = scmp.lt.s32.totalorder %s18_s16, %s18_s16 }
   0xa   :  { %p2144_p3 = scmp.ne.s32.totalorder %s18_s16, %s2143_s24  ;;  %p2149_p5 = scmp.lt.s32.totalorder %s2143_s24, %s2143_s24 }
   0xc   :  { %p2150_p6 = por %p2149_p5, %p2148_p4 }
   0xe   :  { %p2151_p7 = pnand %p2150_p6, %p2144_p3 }
  0x10   :  { %2154 = shalt.err (!%p2151_p7)
}
  0x11   :  { %s2206_s25 = smov 64   ;;  %s2207_s26 = smov 4  }
  0x12   :  { %23 = dma.hbm_to_vmem [thread:$0]  %s2423_s0, 4096, %s18_s16, [#allocation4], %s2206_s25, %s2206_s25, %s2207_s26  }
  0x13   :  { %s2208_s29 = smov [#allocation6]   ;;  %s2155_s7 = scalar_lea.hbm %s2424_s1, 1024 }
  0x14   :  { %s29_s30 = sshll.u32 %s2208_s29, 4  ;;  %p2156_p8 = scmp.ne.s32.totalorder %s2424_s1, %s2155_s7  ;;  %s30_s30 = int_to_ptr.vmem [resolvable:$true] %s29_s30 }
  0x15   :  { %p2159_p9 = scmp.lt.u32.totalorder %s2155_s7, %s2424_s1 }
  0x17   :  { %p2161_p10 = pnand %p2159_p9, %p2156_p8 }
  0x19   :  { %2164 = shalt.err (!%p2161_p10)
}
  0x1a   :  { %s2165_s12 = scalar_lea.vmem %s30_s30, 1024  ;;  %p2170_p12 = scmp.lt.s32.totalorder %s30_s30, %s30_s30 }
  0x1b   :  { %p2166_p11 = scmp.ne.s32.totalorder %s30_s30, %s2165_s12  ;;  %p2171_p13 = scmp.lt.s32.totalorder %s2165_s12, %s2165_s12 }
  0x1d   :  { %p2172_p0 = por %p2171_p13, %p2170_p12 }
  0x1f   :  { %p2173_p1 = pnand %p2172_p0, %p2166_p11 }
  0x21   :  { %2176 = shalt.err (!%p2173_p1)
}
  0x22   :  { %35 = dma.hbm_to_vmem [thread:$0]  %s2424_s1, 1024, %s30_s30, [#allocation7], %s2206_s25, %s2206_s25, %s2207_s26  }
  0x23   :  { %2199 = dma.done.wait [#allocation4], 4096  }
  0x24   :  { %2200 = vsyncadd [#allocation4], 4294963200 }
  0x25   :  { %2201 = dma.done.wait [#allocation7], 1024  }
  0x26   :  { %2202 = vsyncadd [#allocation7], 4294966272  ;;  %v2093_v0 = vld [vmem:[#allocation6] sm:$0xff]   ;;  %v2094_v1 = vld [vmem:[#allocation6 + $0x8] sm:$0xff]  }
  0x27   :  { %1992 = vmatprep.subr.bf16.mxu0 %v2093_v0  ;;  %2072 = vmatprep.subr.bf16.mxu1 %v2093_v0  ;;  %v2095_v2 = vld [vmem:[#allocation6 + $0x10] sm:$0xff]   ;;  %v2096_v3 = vld [vmem:[#allocation6 + $0x18] sm:$0xff]   ;;  %v2101_v4 = vld [vmem:[#allocation3] sm:$0xff]  }
  0x28   :  { %1993 = vmatpush3.bf16.msra.mxu0 %v2093_v0  ;;  %2080 = vmatpush3.bf16.msra.mxu1 %v2093_v0  ;;  %v2102_v5 = vld [vmem:[#allocation3 + $0x80] sm:$0xff]   ;;  %v2098_v7 = vld [vmem:[#allocation6 + $0x28] sm:$0xff]   ;;  %v2099_v8 = vld [vmem:[#allocation6 + $0x30] sm:$0xff]  }
  0x29   :  { %1994 = vmatprep.subr.bf16.mxu0 %v2094_v1  ;;  %2073 = vmatprep.subr.bf16.mxu1 %v2094_v1  ;;  %v2097_v6 = vld [vmem:[#allocation6 + $0x20] sm:$0xff]   ;;  %v2100_v9 = vld [vmem:[#allocation6 + $0x38] sm:$0xff]   ;;  %v2103_v10 = vld [vmem:[#allocation3 + $0x8] sm:$0xff]  }
  0x2a   :  { %2008 = vmatprep.mubr.bf16.mxu0 %v2101_v4  ;;  %2040 = vmatprep.mubr.bf16.mxu1 %v2102_v5  ;;  %v2104_v11 = vld [vmem:[#allocation3 + $0x88] sm:$0xff]   ;;  %v2105_v12 = vld [vmem:[#allocation3 + $0x10] sm:$0xff]   ;;  %v2107_v14 = vld [vmem:[#allocation3 + $0x18] sm:$0xff]  }
  0x2b   :  { %v2106_v13 = vld [vmem:[#allocation3 + $0x90] sm:$0xff]   ;;  %v2108_v15 = vld [vmem:[#allocation3 + $0x98] sm:$0xff]   ;;  %v2109_v16 = vld [vmem:[#allocation3 + $0x20] sm:$0xff]  }
  0x2c   :  { %1995 = vmatpush3.bf16.msra.mxu0 %v2094_v1  ;;  %2081 = vmatpush3.bf16.msra.mxu1 %v2094_v1  ;;  %v2110_v17 = vld [vmem:[#allocation3 + $0xa0] sm:$0xff]   ;;  %v2111_v18 = vld [vmem:[#allocation3 + $0x28] sm:$0xff]   ;;  %v2113_v20 = vld [vmem:[#allocation3 + $0x30] sm:$0xff]  }
  0x2d   :  { %1996 = vmatprep.subr.bf16.mxu0 %v2095_v2  ;;  %2074 = vmatprep.subr.bf16.mxu1 %v2095_v2  ;;  %v2112_v19 = vld [vmem:[#allocation3 + $0xa8] sm:$0xff]   ;;  %v2114_v21 = vld [vmem:[#allocation3 + $0xb0] sm:$0xff]   ;;  %v2115_v22 = vld [vmem:[#allocation3 + $0x38] sm:$0xff]  }
  0x2e   :  { %v2116_v23 = vld [vmem:[#allocation3 + $0xb8] sm:$0xff]   ;;  %v2117_v24 = vld [vmem:[#allocation3 + $0x40] sm:$0xff]   ;;  %v2119_v26 = vld [vmem:[#allocation3 + $0x48] sm:$0xff]  }
  0x2f   :  { %v2118_v25 = vld [vmem:[#allocation3 + $0xc0] sm:$0xff]   ;;  %v2120_v27 = vld [vmem:[#allocation3 + $0xc8] sm:$0xff]   ;;  %v2121_v28 = vld [vmem:[#allocation3 + $0x50] sm:$0xff]  }
  0x30   :  { %1997 = vmatpush3.bf16.msra.mxu0 %v2095_v2  ;;  %2082 = vmatpush3.bf16.msra.mxu1 %v2095_v2  ;;  %v2122_v29 = vld [vmem:[#allocation3 + $0xd0] sm:$0xff]   ;;  %v2123_v30 = vld [vmem:[#allocation3 + $0x58] sm:$0xff]   ;;  %v2125_v32 = vld [vmem:[#allocation3 + $0x60] sm:$0xff]  }
  0x31   :  { %1998 = vmatprep.subr.bf16.mxu0 %v2096_v3  ;;  %2075 = vmatprep.subr.bf16.mxu1 %v2096_v3  ;;  %v2124_v31 = vld [vmem:[#allocation3 + $0xd8] sm:$0xff]   ;;  %v2126_v33 = vld [vmem:[#allocation3 + $0xe0] sm:$0xff]   ;;  %v2127_v34 = vld [vmem:[#allocation3 + $0x68] sm:$0xff]  }
  0x32   :  { %v2128_v35 = vld [vmem:[#allocation3 + $0xe8] sm:$0xff]   ;;  %v2129_v36 = vld [vmem:[#allocation3 + $0x70] sm:$0xff]   ;;  %v2131_v38 = vld [vmem:[#allocation3 + $0x78] sm:$0xff]  }
  0x33   :  { %v2130_v37 = vld [vmem:[#allocation3 + $0xf0] sm:$0xff]   ;;  %v2132_v39 = vld [vmem:[#allocation3 + $0xf8] sm:$0xff]   ;;  %v2268_v40 = vld [vmem:[%s2425_s2] ss:$0 sm:$0xff]  ;;  %s2209_s2 = smov [#allocation8]  }
  0x34   :  { %1999 = vmatpush3.bf16.msra.mxu0 %v2096_v3  ;;  %2083 = vmatpush3.bf16.msra.mxu1 %v2096_v3  ;;  %v2273_v42 = vld [vmem:[%s2426_s3] ss:$0 sm:$0xff]  ;;  %s1578_s3 = sshll.u32 %s2209_s2, 4  ;;  %s1579_s3 = int_to_ptr.vmem [resolvable:$true] %s1578_s3 }
  0x35   :  { %2000 = vmatprep.subr.bf16.mxu0 %v2097_v6  ;;  %2076 = vmatprep.subr.bf16.mxu1 %v2097_v6  ;;  %s2177_s17 = scalar_lea.vmem %s1579_s3, 4096  ;;  %p2182_p3 = scmp.lt.s32.totalorder %s1579_s3, %s1579_s3 }
  0x36   :  { %p2178_p2 = scmp.ne.s32.totalorder %s1579_s3, %s2177_s17  ;;  %p2183_p4 = scmp.lt.s32.totalorder %s2177_s17, %s2177_s17 }
  0x38   :  { %2001 = vmatpush3.bf16.msra.mxu0 %v2097_v6  ;;  %2084 = vmatpush3.bf16.msra.mxu1 %v2097_v6  ;;  %p2184_p5 = por %p2183_p4, %p2182_p3 }
  0x39   :  { %2002 = vmatprep.subr.bf16.mxu0 %v2098_v7  ;;  %2077 = vmatprep.subr.bf16.mxu1 %v2098_v7 }
  0x3a   :  { %p2185_p6 = pnand %p2184_p5, %p2178_p2 }
  0x3c   :  { %2003 = vmatpush3.bf16.msra.mxu0 %v2098_v7  ;;  %2085 = vmatpush3.bf16.msra.mxu1 %v2098_v7 }
  0x3d   :  { %2004 = vmatprep.subr.bf16.mxu0 %v2099_v8  ;;  %2078 = vmatprep.subr.bf16.mxu1 %v2099_v8 }
  0x40   :  { %2005 = vmatpush3.bf16.msra.mxu0 %v2099_v8  ;;  %2086 = vmatpush3.bf16.msra.mxu1 %v2099_v8 }
  0x41   :  { %2006 = vmatprep.subr.bf16.mxu0 %v2100_v9  ;;  %2079 = vmatprep.subr.bf16.mxu1 %v2100_v9 }
  0x44   :  { %2007 = vmatpush3.bf16.msra.mxu0 %v2100_v9  ;;  %2087 = vmatpush3.bf16.msra.mxu1 %v2100_v9 }
  0x47   :  { %2009 = vmatmul.mubr.bf16.vlgmr.msra.gmra.mrb[0].mxu0 %v2103_v10  ;;  %2041 = vmatmul.mubr.bf16.vlgmr.msra.gmra.mrb[0].mxu1 %v2104_v11 }
  0x48   :  { %2012 = vmatprep.mubr.bf16.mxu0 %v2105_v12  ;;  %2044 = vmatprep.mubr.bf16.mxu1 %v2106_v13 }
  0x4f   :  { %2013 = vmatmul.mubr.bf16.gmra.mrb[4].mxu0 %v2107_v14  ;;  %2045 = vmatmul.mubr.bf16.gmra.mrb[4].mxu1 %v2108_v15 }
  0x50   :  { %2016 = vmatprep.mubr.bf16.mxu0 %v2109_v16  ;;  %2048 = vmatprep.mubr.bf16.mxu1 %v2110_v17 }
  0x57   :  { %2017 = vmatmul.mubr.bf16.gmra.mrb[8].mxu0 %v2111_v18  ;;  %2049 = vmatmul.mubr.bf16.gmra.mrb[8].mxu1 %v2112_v19 }
  0x58   :  { %2020 = vmatprep.mubr.bf16.mxu0 %v2113_v20  ;;  %2052 = vmatprep.mubr.bf16.mxu1 %v2114_v21 }
  0x5f   :  { %2021 = vmatmul.mubr.bf16.gmra.mrb[12].mxu0 %v2115_v22  ;;  %2053 = vmatmul.mubr.bf16.gmra.mrb[12].mxu1 %v2116_v23 }
  0x60   :  { %2024 = vmatprep.mubr.bf16.mxu0 %v2117_v24  ;;  %2056 = vmatprep.mubr.bf16.mxu1 %v2118_v25 }
  0x67   :  { %2025 = vmatmul.mubr.bf16.gmra.mrb[16].mxu0 %v2119_v26  ;;  %2057 = vmatmul.mubr.bf16.gmra.mrb[16].mxu1 %v2120_v27 }
  0x68   :  { %2028 = vmatprep.mubr.bf16.mxu0 %v2121_v28  ;;  %2060 = vmatprep.mubr.bf16.mxu1 %v2122_v29 }
  0x6f   :  { %2029 = vmatmul.mubr.bf16.gmra.mrb[20].mxu0 %v2123_v30  ;;  %2061 = vmatmul.mubr.bf16.gmra.mrb[20].mxu1 %v2124_v31 }
  0x70   :  { %2032 = vmatprep.mubr.bf16.mxu0 %v2125_v32  ;;  %2064 = vmatprep.mubr.bf16.mxu1 %v2126_v33 }
  0x77   :  { %2033 = vmatmul.mubr.bf16.gmra.mrb[24].mxu0 %v2127_v34  ;;  %2065 = vmatmul.mubr.bf16.gmra.mrb[24].mxu1 %v2128_v35 }
  0x78   :  { %2036 = vmatprep.mubr.bf16.mxu0 %v2129_v36  ;;  %2068 = vmatprep.mubr.bf16.mxu1 %v2130_v37 }
  0x7f   :  { %2037 = vmatmul.mubr.bf16.gmra.mrb[28].mxu0 %v2131_v38  ;;  %2069 = vmatmul.mubr.bf16.gmra.mrb[28].mxu1 %v2132_v39 }
 0x11a   :  { %v2010_v41 = vpop.f32.mrb[0].mxu0  ;;  %v2042_v43 = vpop.f32.mrb[0].mxu1 }
 0x11b   :  { %v992_v44 = vadd.f32 %v2010_v41, %v2268_v40  ;;  %v1024_v45 = vadd.f32 %v2042_v43, %v2268_v40  ;;  %v533_v46 = vpop.f32.mrb[1].mxu0  ;;  %v661_v47 = vpop.f32.mrb[1].mxu1 }
 0x11c   :  { %v990_v48 = vadd.f32 %v2268_v40, %v533_v46  ;;  %v1022_v49 = vadd.f32 %v2268_v40, %v661_v47  ;;  %v2011_v50 = vpop.f32.mrb[2].mxu0  ;;  %v2043_v51 = vpop.f32.mrb[2].mxu1 }
 0x11d   :  { %vm1056_vm0 = vcmp.ge.f32.partialorder %v992_v44, 0.0  ;;  %v1127_v52 = vmul.f32 %v2273_v42, %v992_v44  ;;  %vm1088_vm1 = vcmp.ge.f32.partialorder %v1024_v45, 0.0  ;;  %v1159_v53 = vmul.f32 %v2273_v42, %v1024_v45  ;;  %v536_v54 = vpop.f32.mrb[3].mxu0  ;;  %v664_v55 = vpop.f32.mrb[3].mxu1 }
 0x11e   :  { %vm1054_vm2 = vcmp.ge.f32.partialorder %v990_v48, 0.0  ;;  %v1125_v56 = vmul.f32 %v2273_v42, %v990_v48  ;;  %vm1086_vm3 = vcmp.ge.f32.partialorder %v1022_v49, 0.0  ;;  %v1157_v57 = vmul.f32 %v2273_v42, %v1022_v49 }
 0x11f   :  { %v1191_v58 = vsel %vm1056_vm0, %v992_v44, %v1127_v52  ;;  %v1223_v59 = vsel %vm1088_vm1, %v1024_v45, %v1159_v53  ;;  %v993_v60 = vadd.f32 %v2011_v50, %v2268_v40  ;;  %v1025_v61 = vadd.f32 %v2043_v51, %v2268_v40 }
 0x120   :  { %v1189_v62 = vsel %vm1054_vm2, %v990_v48, %v1125_v56  ;;  %v1221_v63 = vsel %vm1086_vm3, %v1022_v49, %v1157_v57  ;;  %v991_v0 = vadd.f32 %v2268_v40, %v536_v54  ;;  %v1023_v1 = vadd.f32 %v2268_v40, %v664_v55 }
 0x121   :  { %vm1057_vm4 = vcmp.ge.f32.partialorder %v993_v60, 0.0  ;;  %v1128_v2 = vmul.f32 %v2273_v42, %v993_v60  ;;  %vm1089_vm5 = vcmp.ge.f32.partialorder %v1025_v61, 0.0  ;;  %v1160_v3 = vmul.f32 %v2273_v42, %v1025_v61 }
 0x122   :  { %vm1055_vm6 = vcmp.ge.f32.partialorder %v991_v0, 0.0  ;;  %v1126_v4 = vmul.f32 %v2273_v42, %v991_v0  ;;  %vm1087_vm7 = vcmp.ge.f32.partialorder %v1023_v1, 0.0  ;;  %v1158_v5 = vmul.f32 %v2273_v42, %v1023_v1  ;;  %v2014_v6 = vpop.f32.mrb[4].mxu0  ;;  %v2046_v7 = vpop.f32.mrb[4].mxu1 }
 0x123   :  { %v1192_v8 = vsel %vm1057_vm4, %v993_v60, %v1128_v2  ;;  %v1224_v9 = vsel %vm1089_vm5, %v1025_v61, %v1160_v3  ;;  %v996_v10 = vadd.f32 %v2014_v6, %v2268_v40  ;;  %v1028_v11 = vadd.f32 %v2046_v7, %v2268_v40  ;;  %v549_v12 = vpop.f32.mrb[5].mxu0  ;;  %v677_v13 = vpop.f32.mrb[5].mxu1 }
 0x124   :  { %v1769_v14 = vpack.c.bf16 %v1192_v8, %v1191_v58  ;;  %v1849_v15 = vpack.c.bf16 %v1224_v9, %v1223_v59  ;;  %v1190_v16 = vsel %vm1055_vm6, %v991_v0, %v1126_v4  ;;  %v1222_v17 = vsel %vm1087_vm7, %v1023_v1, %v1158_v5  ;;  %v2015_v18 = vpop.f32.mrb[6].mxu0  ;;  %v2047_v19 = vpop.f32.mrb[6].mxu1 }
 0x125   :  { %v1764_v20 = vpack.c.bf16 %v1190_v16, %v1189_v62  ;;  %v1844_v21 = vpack.c.bf16 %v1222_v17, %v1221_v63  ;;  %vm1060_vm8 = vcmp.ge.f32.partialorder %v996_v10, 0.0  ;;  %v1131_v22 = vmul.f32 %v2273_v42, %v996_v10  ;;  %v552_v23 = vpop.f32.mrb[7].mxu0  ;;  %v680_v24 = vpop.f32.mrb[7].mxu1 }
 0x126   :  { %1921 = vst [vmem:[#allocation8 + $0x8] sm:$0xff] %v1769_v14   ;;  %1937 = vst [vmem:[#allocation8 + $0x88] sm:$0xff] %v1849_v15   ;;  %vm1092_vm9 = vcmp.ge.f32.partialorder %v1028_v11, 0.0  ;;  %v1163_v25 = vmul.f32 %v2273_v42, %v1028_v11  ;;  %v994_v26 = vadd.f32 %v2268_v40, %v549_v12  ;;  %v1026_v27 = vadd.f32 %v2268_v40, %v677_v13 }
 0x127   :  { %1765 = vst [vmem:[#allocation8] sm:$0xff] %v1764_v20   ;;  %1936 = vst [vmem:[#allocation8 + $0x80] sm:$0xff] %v1844_v21   ;;  %v1195_v28 = vsel %vm1060_vm8, %v996_v10, %v1131_v22  ;;  %v997_v29 = vadd.f32 %v2015_v18, %v2268_v40  ;;  %v1029_v30 = vadd.f32 %v2047_v19, %v2268_v40 }
 0x128   :  { %v995_v31 = vadd.f32 %v2268_v40, %v552_v23  ;;  %v1227_v32 = vsel %vm1092_vm9, %v1028_v11, %v1163_v25  ;;  %vm1058_vm10 = vcmp.ge.f32.partialorder %v994_v26, 0.0  ;;  %v1129_v33 = vmul.f32 %v2273_v42, %v994_v26 }
 0x129   :  { %vm1090_vm11 = vcmp.ge.f32.partialorder %v1026_v27, 0.0  ;;  %v1161_v34 = vmul.f32 %v2273_v42, %v1026_v27  ;;  %vm1061_vm12 = vcmp.ge.f32.partialorder %v997_v29, 0.0  ;;  %v1132_v35 = vmul.f32 %v2273_v42, %v997_v29 }
 0x12a   :  { %vm1093_vm13 = vcmp.ge.f32.partialorder %v1029_v30, 0.0  ;;  %v1193_v36 = vsel %vm1058_vm10, %v994_v26, %v1129_v33  ;;  %v1164_v37 = vmul.f32 %v2273_v42, %v1029_v30  ;;  %vm1059_vm14 = vcmp.ge.f32.partialorder %v995_v31, 0.0  ;;  %v2018_v39 = vpop.f32.mrb[8].mxu0  ;;  %v2050_v41 = vpop.f32.mrb[8].mxu1 }
 0x12b   :  { %v1130_v38 = vmul.f32 %v2273_v42, %v995_v31  ;;  %v1225_v43 = vsel %vm1090_vm11, %v1026_v27, %v1161_v34  ;;  %v1196_v44 = vsel %vm1061_vm12, %v997_v29, %v1132_v35  ;;  %v1027_v45 = vadd.f32 %v2268_v40, %v680_v24  ;;  %v565_v47 = vpop.f32.mrb[9].mxu0  ;;  %v693_v48 = vpop.f32.mrb[9].mxu1 }
 0x12c   :  { %v1000_v46 = vadd.f32 %v2018_v39, %v2268_v40  ;;  %v1779_v49 = vpack.c.bf16 %v1196_v44, %v1195_v28  ;;  %v1228_v50 = vsel %vm1093_vm13, %v1029_v30, %v1164_v37  ;;  %v1032_v52 = vadd.f32 %v2050_v41, %v2268_v40  ;;  %v2019_v53 = vpop.f32.mrb[10].mxu0  ;;  %v2051_v54 = vpop.f32.mrb[10].mxu1 }
 0x12d   :  { %v1194_v51 = vsel %vm1059_vm14, %v995_v31, %v1130_v38  ;;  %v1859_v55 = vpack.c.bf16 %v1228_v50, %v1227_v32  ;;  %vm1091_vm15 = vcmp.ge.f32.partialorder %v1027_v45, 0.0  ;;  %v1162_v57 = vmul.f32 %v2273_v42, %v1027_v45  ;;  %v568_v58 = vpop.f32.mrb[11].mxu0  ;;  %v696_v59 = vpop.f32.mrb[11].mxu1 }
 0x12e   :  { %v1774_v56 = vpack.c.bf16 %v1194_v51, %v1193_v36  ;;  %1923 = vst [vmem:[#allocation8 + $0x18] sm:$0xff] %v1779_v49   ;;  %vm1064_vm0 = vcmp.ge.f32.partialorder %v1000_v46, 0.0  ;;  %v1135_v60 = vmul.f32 %v2273_v42, %v1000_v46  ;;  %vm1096_vm1 = vcmp.ge.f32.partialorder %v1032_v52, 0.0 }
 0x12f   :  { %v1167_v61 = vmul.f32 %v2273_v42, %v1032_v52  ;;  %1939 = vst [vmem:[#allocation8 + $0x98] sm:$0xff] %v1859_v55   ;;  %v1226_v62 = vsel %vm1091_vm15, %v1027_v45, %v1162_v57  ;;  %v998_v63 = vadd.f32 %v2268_v40, %v565_v47  ;;  %v1030_v0 = vadd.f32 %v2268_v40, %v693_v48 }
 0x130   :  { %1922 = vst [vmem:[#allocation8 + $0x10] sm:$0xff] %v1774_v56   ;;  %v1001_v1 = vadd.f32 %v2019_v53, %v2268_v40  ;;  %v1854_v2 = vpack.c.bf16 %v1226_v62, %v1225_v43  ;;  %v1199_v3 = vsel %vm1064_vm0, %v1000_v46, %v1135_v60  ;;  %v1033_v5 = vadd.f32 %v2051_v54, %v2268_v40 }
 0x131   :  { %v1231_v4 = vsel %vm1096_vm1, %v1032_v52, %v1167_v61  ;;  %vm1062_vm2 = vcmp.ge.f32.partialorder %v998_v63, 0.0  ;;  %v1133_v6 = vmul.f32 %v2273_v42, %v998_v63  ;;  %vm1094_vm3 = vcmp.ge.f32.partialorder %v1030_v0, 0.0 }
 0x132   :  { %v1165_v7 = vmul.f32 %v2273_v42, %v1030_v0  ;;  %1938 = vst [vmem:[#allocation8 + $0x90] sm:$0xff] %v1854_v2   ;;  %vm1065_vm4 = vcmp.ge.f32.partialorder %v1001_v1, 0.0  ;;  %v1136_v8 = vmul.f32 %v2273_v42, %v1001_v1  ;;  %vm1097_vm5 = vcmp.ge.f32.partialorder %v1033_v5, 0.0  ;;  %v2022_v10 = vpop.f32.mrb[12].mxu0  ;;  %v2054_v11 = vpop.f32.mrb[12].mxu1 }
 0x133   :  { %v1168_v9 = vmul.f32 %v2273_v42, %v1033_v5  ;;  %v1197_v12 = vsel %vm1062_vm2, %v998_v63, %v1133_v6  ;;  %v999_v14 = vadd.f32 %v2268_v40, %v568_v58  ;;  %v1031_v15 = vadd.f32 %v2268_v40, %v696_v59  ;;  %v581_v16 = vpop.f32.mrb[13].mxu0  ;;  %v709_v17 = vpop.f32.mrb[13].mxu1 }
 0x134   :  { %v1229_v13 = vsel %vm1094_vm3, %v1030_v0, %v1165_v7  ;;  %v1200_v18 = vsel %vm1065_vm4, %v1001_v1, %v1136_v8  ;;  %v1004_v20 = vadd.f32 %v2022_v10, %v2268_v40  ;;  %v1036_v21 = vadd.f32 %v2054_v11, %v2268_v40  ;;  %v2023_v22 = vpop.f32.mrb[14].mxu0  ;;  %v2055_v23 = vpop.f32.mrb[14].mxu1 }
 0x135   :  { %v1232_v19 = vsel %vm1097_vm5, %v1033_v5, %v1168_v9  ;;  %v1789_v24 = vpack.c.bf16 %v1200_v18, %v1199_v3  ;;  %vm1063_vm6 = vcmp.ge.f32.partialorder %v999_v14, 0.0  ;;  %v1134_v26 = vmul.f32 %v2273_v42, %v999_v14  ;;  %v584_v27 = vpop.f32.mrb[15].mxu0  ;;  %v712_v28 = vpop.f32.mrb[15].mxu1 }
 0x136   :  { %v1869_v25 = vpack.c.bf16 %v1232_v19, %v1231_v4  ;;  %vm1095_vm7 = vcmp.ge.f32.partialorder %v1031_v15, 0.0  ;;  %v1166_v29 = vmul.f32 %v2273_v42, %v1031_v15  ;;  %vm1068_vm8 = vcmp.ge.f32.partialorder %v1004_v20, 0.0 }
 0x137   :  { %v1139_v30 = vmul.f32 %v2273_v42, %v1004_v20  ;;  %1925 = vst [vmem:[#allocation8 + $0x28] sm:$0xff] %v1789_v24   ;;  %v1198_v31 = vsel %vm1063_vm6, %v999_v14, %v1134_v26  ;;  %vm1100_vm9 = vcmp.ge.f32.partialorder %v1036_v21, 0.0  ;;  %v1171_v32 = vmul.f32 %v2273_v42, %v1036_v21 }
 0x138   :  { %1941 = vst [vmem:[#allocation8 + $0xa8] sm:$0xff] %v1869_v25   ;;  %v1002_v33 = vadd.f32 %v2268_v40, %v581_v16  ;;  %v1784_v34 = vpack.c.bf16 %v1198_v31, %v1197_v12  ;;  %v1230_v35 = vsel %vm1095_vm7, %v1031_v15, %v1166_v29  ;;  %v1034_v37 = vadd.f32 %v2268_v40, %v709_v17 }
 0x139   :  { %v1203_v36 = vsel %vm1068_vm8, %v1004_v20, %v1139_v30  ;;  %v1864_v38 = vpack.c.bf16 %v1230_v35, %v1229_v13  ;;  %v1235_v39 = vsel %vm1100_vm9, %v1036_v21, %v1171_v32  ;;  %v1005_v44 = vadd.f32 %v2023_v22, %v2268_v40 }
 0x13a   :  { %vm1066_vm10 = vcmp.ge.f32.partialorder %v1002_v33, 0.0  ;;  %v1137_v41 = vmul.f32 %v2273_v42, %v1002_v33  ;;  %1924 = vst [vmem:[#allocation8 + $0x20] sm:$0xff] %v1784_v34   ;;  %vm1098_vm11 = vcmp.ge.f32.partialorder %v1034_v37, 0.0  ;;  %v1169_v43 = vmul.f32 %v2273_v42, %v1034_v37  ;;  %v2026_v46 = vpop.f32.mrb[16].mxu0  ;;  %v2058_v47 = vpop.f32.mrb[16].mxu1 }
 0x13b   :  { %v1037_v45 = vadd.f32 %v2055_v23, %v2268_v40  ;;  %1940 = vst [vmem:[#allocation8 + $0xa0] sm:$0xff] %v1864_v38   ;;  %v1003_v49 = vadd.f32 %v2268_v40, %v584_v27  ;;  %v1035_v50 = vadd.f32 %v2268_v40, %v712_v28  ;;  %v1008_v51 = vadd.f32 %v2026_v46, %v2268_v40  ;;  %v597_v52 = vpop.f32.mrb[17].mxu0  ;;  %v725_v53 = vpop.f32.mrb[17].mxu1 }
 0x13c   :  { %v1201_v48 = vsel %vm1066_vm10, %v1002_v33, %v1137_v41  ;;  %v1233_v54 = vsel %vm1098_vm11, %v1034_v37, %v1169_v43  ;;  %vm1069_vm12 = vcmp.ge.f32.partialorder %v1005_v44, 0.0  ;;  %v1140_v55 = vmul.f32 %v2273_v42, %v1005_v44  ;;  %v2027_v56 = vpop.f32.mrb[18].mxu0  ;;  %v2059_v57 = vpop.f32.mrb[18].mxu1 }
 0x13d   :  { %vm1101_vm13 = vcmp.ge.f32.partialorder %v1037_v45, 0.0  ;;  %v1172_v58 = vmul.f32 %v2273_v42, %v1037_v45  ;;  %vm1067_vm14 = vcmp.ge.f32.partialorder %v1003_v49, 0.0  ;;  %v1138_v59 = vmul.f32 %v2273_v42, %v1003_v49  ;;  %v600_v60 = vpop.f32.mrb[19].mxu0  ;;  %v728_v61 = vpop.f32.mrb[19].mxu1 }
 0x13e   :  { %vm1099_vm15 = vcmp.ge.f32.partialorder %v1035_v50, 0.0  ;;  %v1204_v62 = vsel %vm1069_vm12, %v1005_v44, %v1140_v55  ;;  %v1170_v63 = vmul.f32 %v2273_v42, %v1035_v50  ;;  %vm1072_vm0 = vcmp.ge.f32.partialorder %v1008_v51, 0.0 }
 0x13f   :  { %v1143_v0 = vmul.f32 %v2273_v42, %v1008_v51  ;;  %v1799_v1 = vpack.c.bf16 %v1204_v62, %v1203_v36  ;;  %v1236_v2 = vsel %vm1101_vm13, %v1037_v45, %v1172_v58  ;;  %v1202_v3 = vsel %vm1067_vm14, %v1003_v49, %v1138_v59 }
 0x140   :  { %v1040_v4 = vadd.f32 %v2058_v47, %v2268_v40  ;;  %v1879_v5 = vpack.c.bf16 %v1236_v2, %v1235_v39  ;;  %v1794_v6 = vpack.c.bf16 %v1202_v3, %v1201_v48  ;;  %v1234_v7 = vsel %vm1099_vm15, %v1035_v50, %v1170_v63 }
 0x141   :  { %v1207_v8 = vsel %vm1072_vm0, %v1008_v51, %v1143_v0  ;;  %1927 = vst [vmem:[#allocation8 + $0x38] sm:$0xff] %v1799_v1   ;;  %v1874_v9 = vpack.c.bf16 %v1234_v7, %v1233_v54  ;;  %v1006_v11 = vadd.f32 %v2268_v40, %v597_v52  ;;  %v1038_v12 = vadd.f32 %v2268_v40, %v725_v53 }
 0x142   :  { %vm1104_vm1 = vcmp.ge.f32.partialorder %v1040_v4, 0.0  ;;  %v1175_v10 = vmul.f32 %v2273_v42, %v1040_v4  ;;  %1943 = vst [vmem:[#allocation8 + $0xb8] sm:$0xff] %v1879_v5   ;;  %1926 = vst [vmem:[#allocation8 + $0x30] sm:$0xff] %v1794_v6   ;;  %v1009_v13 = vadd.f32 %v2027_v56, %v2268_v40  ;;  %v1041_v14 = vadd.f32 %v2059_v57, %v2268_v40  ;;  %v2030_v16 = vpop.f32.mrb[20].mxu0  ;;  %v2062_v17 = vpop.f32.mrb[20].mxu1 }
 0x143   :  { %v1007_v15 = vadd.f32 %v2268_v40, %v600_v60  ;;  %1942 = vst [vmem:[#allocation8 + $0xb0] sm:$0xff] %v1874_v9   ;;  %vm1070_vm2 = vcmp.ge.f32.partialorder %v1006_v11, 0.0  ;;  %v1141_v19 = vmul.f32 %v2273_v42, %v1006_v11  ;;  %v1039_v20 = vadd.f32 %v2268_v40, %v728_v61  ;;  %v613_v21 = vpop.f32.mrb[21].mxu0  ;;  %v741_v22 = vpop.f32.mrb[21].mxu1 }
 0x144   :  { %v1239_v18 = vsel %vm1104_vm1, %v1040_v4, %v1175_v10  ;;  %vm1102_vm3 = vcmp.ge.f32.partialorder %v1038_v12, 0.0  ;;  %v1173_v23 = vmul.f32 %v2273_v42, %v1038_v12  ;;  %vm1073_vm4 = vcmp.ge.f32.partialorder %v1009_v13, 0.0  ;;  %v2031_v25 = vpop.f32.mrb[22].mxu0  ;;  %v2063_v26 = vpop.f32.mrb[22].mxu1 }
 0x145   :  { %v1144_v24 = vmul.f32 %v2273_v42, %v1009_v13  ;;  %v1205_v27 = vsel %vm1070_vm2, %v1006_v11, %v1141_v19  ;;  %vm1105_vm5 = vcmp.ge.f32.partialorder %v1041_v14, 0.0  ;;  %v1176_v28 = vmul.f32 %v2273_v42, %v1041_v14  ;;  %v616_v29 = vpop.f32.mrb[23].mxu0  ;;  %v744_v30 = vpop.f32.mrb[23].mxu1 }
 0x146   :  { %vm1071_vm6 = vcmp.ge.f32.partialorder %v1007_v15, 0.0  ;;  %v1237_v31 = vsel %vm1102_vm3, %v1038_v12, %v1173_v23  ;;  %v1142_v33 = vmul.f32 %v2273_v42, %v1007_v15  ;;  %vm1103_vm7 = vcmp.ge.f32.partialorder %v1039_v20, 0.0 }
 0x147   :  { %v1208_v32 = vsel %vm1073_vm4, %v1009_v13, %v1144_v24  ;;  %v1240_v35 = vsel %vm1105_vm5, %v1041_v14, %v1176_v28  ;;  %v1174_v36 = vmul.f32 %v2273_v42, %v1039_v20  ;;  %v1012_v37 = vadd.f32 %v2030_v16, %v2268_v40 }
 0x148   :  { %v1809_v34 = vpack.c.bf16 %v1208_v32, %v1207_v8  ;;  %v1889_v38 = vpack.c.bf16 %v1240_v35, %v1239_v18  ;;  %v1206_v39 = vsel %vm1071_vm6, %v1007_v15, %v1142_v33  ;;  %v1044_v41 = vadd.f32 %v2062_v17, %v2268_v40 }
 0x149   :  { %v1010_v43 = vadd.f32 %v2268_v40, %v613_v21  ;;  %v1804_v44 = vpack.c.bf16 %v1206_v39, %v1205_v27  ;;  %v1238_v45 = vsel %vm1103_vm7, %v1039_v20, %v1174_v36  ;;  %vm1076_vm8 = vcmp.ge.f32.partialorder %v1012_v37, 0.0 }
 0x14a   :  { %1929 = vst [vmem:[#allocation8 + $0x48] sm:$0xff] %v1809_v34   ;;  %v1147_v46 = vmul.f32 %v2273_v42, %v1012_v37  ;;  %1945 = vst [vmem:[#allocation8 + $0xc8] sm:$0xff] %v1889_v38   ;;  %v1884_v47 = vpack.c.bf16 %v1238_v45, %v1237_v31  ;;  %vm1108_vm9 = vcmp.ge.f32.partialorder %v1044_v41, 0.0  ;;  %v1179_v48 = vmul.f32 %v2273_v42, %v1044_v41  ;;  %v2034_v49 = vpop.f32.mrb[24].mxu0  ;;  %v2066_v50 = vpop.f32.mrb[24].mxu1 }
 0x14b   :  { %vm1074_vm10 = vcmp.ge.f32.partialorder %v1010_v43, 0.0  ;;  %1928 = vst [vmem:[#allocation8 + $0x40] sm:$0xff] %v1804_v44   ;;  %v1145_v52 = vmul.f32 %v2273_v42, %v1010_v43  ;;  %v1042_v53 = vadd.f32 %v2268_v40, %v741_v22  ;;  %v1013_v54 = vadd.f32 %v2031_v25, %v2268_v40  ;;  %v629_v55 = vpop.f32.mrb[25].mxu0  ;;  %v757_v56 = vpop.f32.mrb[25].mxu1 }
 0x14c   :  { %v1211_v51 = vsel %vm1076_vm8, %v1012_v37, %v1147_v46  ;;  %1944 = vst [vmem:[#allocation8 + $0xc0] sm:$0xff] %v1884_v47   ;;  %v1243_v57 = vsel %vm1108_vm9, %v1044_v41, %v1179_v48  ;;  %v1045_v58 = vadd.f32 %v2063_v26, %v2268_v40  ;;  %v1011_v59 = vadd.f32 %v2268_v40, %v616_v29  ;;  %v2035_v61 = vpop.f32.mrb[26].mxu0  ;;  %v2067_v62 = vpop.f32.mrb[26].mxu1 }
 0x14d   :  { %v1043_v60 = vadd.f32 %v2268_v40, %v744_v30  ;;  %v1209_v63 = vsel %vm1074_vm10, %v1010_v43, %v1145_v52  ;;  %vm1106_vm11 = vcmp.ge.f32.partialorder %v1042_v53, 0.0  ;;  %v1177_v0 = vmul.f32 %v2273_v42, %v1042_v53  ;;  %v632_v1 = vpop.f32.mrb[27].mxu0  ;;  %v760_v2 = vpop.f32.mrb[27].mxu1 }
 0x14e   :  { %vm1077_vm12 = vcmp.ge.f32.partialorder %v1013_v54, 0.0  ;;  %v1148_v3 = vmul.f32 %v2273_v42, %v1013_v54  ;;  %vm1109_vm13 = vcmp.ge.f32.partialorder %v1045_v58, 0.0  ;;  %v1180_v4 = vmul.f32 %v2273_v42, %v1045_v58 }
 0x14f   :  { %vm1075_vm14 = vcmp.ge.f32.partialorder %v1011_v59, 0.0  ;;  %v1241_v5 = vsel %vm1106_vm11, %v1042_v53, %v1177_v0  ;;  %v1146_v6 = vmul.f32 %v2273_v42, %v1011_v59  ;;  %vm1107_vm15 = vcmp.ge.f32.partialorder %v1043_v60, 0.0 }
 0x150   :  { %v1178_v7 = vmul.f32 %v2273_v42, %v1043_v60  ;;  %v1212_v8 = vsel %vm1077_vm12, %v1013_v54, %v1148_v3  ;;  %v1244_v9 = vsel %vm1109_vm13, %v1045_v58, %v1180_v4  ;;  %v1016_v10 = vadd.f32 %v2034_v49, %v2268_v40 }
 0x151   :  { %v1048_v11 = vadd.f32 %v2066_v50, %v2268_v40  ;;  %v1819_v12 = vpack.c.bf16 %v1212_v8, %v1211_v51  ;;  %v1899_v13 = vpack.c.bf16 %v1244_v9, %v1243_v57  ;;  %v1210_v14 = vsel %vm1075_vm14, %v1011_v59, %v1146_v6 }
 0x152   :  { %v1242_v15 = vsel %vm1107_vm15, %v1043_v60, %v1178_v7  ;;  %v1814_v16 = vpack.c.bf16 %v1210_v14, %v1209_v63  ;;  %vm1080_vm0 = vcmp.ge.f32.partialorder %v1016_v10, 0.0  ;;  %v1151_v18 = vmul.f32 %v2273_v42, %v1016_v10  ;;  %v2038_v19 = vpop.f32.mrb[28].mxu0  ;;  %v2070_v20 = vpop.f32.mrb[28].mxu1 }
 0x153   :  { %v1894_v17 = vpack.c.bf16 %v1242_v15, %v1241_v5  ;;  %1931 = vst [vmem:[#allocation8 + $0x58] sm:$0xff] %v1819_v12   ;;  %1947 = vst [vmem:[#allocation8 + $0xd8] sm:$0xff] %v1899_v13   ;;  %vm1112_vm1 = vcmp.ge.f32.partialorder %v1048_v11, 0.0  ;;  %v1183_v21 = vmul.f32 %v2273_v42, %v1048_v11  ;;  %v1014_v22 = vadd.f32 %v2268_v40, %v629_v55  ;;  %v645_v24 = vpop.f32.mrb[29].mxu0  ;;  %v773_v25 = vpop.f32.mrb[29].mxu1 }
 0x154   :  { %v1046_v23 = vadd.f32 %v2268_v40, %v757_v56  ;;  %1930 = vst [vmem:[#allocation8 + $0x50] sm:$0xff] %v1814_v16   ;;  %v1017_v26 = vadd.f32 %v2035_v61, %v2268_v40  ;;  %v1049_v27 = vadd.f32 %v2067_v62, %v2268_v40  ;;  %v1015_v28 = vadd.f32 %v2268_v40, %v632_v1  ;;  %v2039_v29 = vpop.f32.mrb[30].mxu0  ;;  %v2071_v30 = vpop.f32.mrb[30].mxu1 }
 0x155   :  { %1946 = vst [vmem:[#allocation8 + $0xd0] sm:$0xff] %v1894_v17   ;;  %v1215_v31 = vsel %vm1080_vm0, %v1016_v10, %v1151_v18  ;;  %v1247_v32 = vsel %vm1112_vm1, %v1048_v11, %v1183_v21  ;;  %vm1078_vm2 = vcmp.ge.f32.partialorder %v1014_v22, 0.0  ;;  %v1149_v33 = vmul.f32 %v2273_v42, %v1014_v22  ;;  %v648_v34 = vpop.f32.mrb[31].mxu0  ;;  %v776_v35 = vpop.f32.mrb[31].mxu1 }
 0x156   :  { %vm1110_vm3 = vcmp.ge.f32.partialorder %v1046_v23, 0.0  ;;  %vm1081_vm4 = vcmp.ge.f32.partialorder %v1017_v26, 0.0  ;;  %v1152_v36 = vmul.f32 %v2273_v42, %v1017_v26  ;;  %vm1113_vm5 = vcmp.ge.f32.partialorder %v1049_v27, 0.0 }
 0x157   :  { %v1181_v37 = vmul.f32 %v2273_v42, %v1046_v23  ;;  %v1184_v38 = vmul.f32 %v2273_v42, %v1049_v27  ;;  %vm1079_vm6 = vcmp.ge.f32.partialorder %v1015_v28, 0.0  ;;  %v1150_v39 = vmul.f32 %v2273_v42, %v1015_v28 }
 0x158   :  { %v1213_v41 = vsel %vm1078_vm2, %v1014_v22, %v1149_v33  ;;  %v1216_v43 = vsel %vm1081_vm4, %v1017_v26, %v1152_v36  ;;  %v1047_v44 = vadd.f32 %v2268_v40, %v760_v2  ;;  %v1020_v45 = vadd.f32 %v2038_v19, %v2268_v40 }
 0x159   :  { %v1829_v46 = vpack.c.bf16 %v1216_v43, %v1215_v31  ;;  %v1248_v47 = vsel %vm1113_vm5, %v1049_v27, %v1184_v38  ;;  %v1214_v48 = vsel %vm1079_vm6, %v1015_v28, %v1150_v39  ;;  %v1052_v49 = vadd.f32 %v2070_v20, %v2268_v40 }
 0x15a   :  { %v1909_v50 = vpack.c.bf16 %v1248_v47, %v1247_v32  ;;  %v1824_v51 = vpack.c.bf16 %v1214_v48, %v1213_v41  ;;  %vm1111_vm7 = vcmp.ge.f32.partialorder %v1047_v44, 0.0  ;;  %v1182_v52 = vmul.f32 %v2273_v42, %v1047_v44 }
 0x15b   :  { %1933 = vst [vmem:[#allocation8 + $0x68] sm:$0xff] %v1829_v46   ;;  %vm1084_vm8 = vcmp.ge.f32.partialorder %v1020_v45, 0.0  ;;  %v1155_v53 = vmul.f32 %v2273_v42, %v1020_v45  ;;  %vm1116_vm9 = vcmp.ge.f32.partialorder %v1052_v49, 0.0  ;;  %v1187_v54 = vmul.f32 %v2273_v42, %v1052_v49 }
 0x15c   :  { %v1245_v55 = vsel %vm1110_vm3, %v1046_v23, %v1181_v37  ;;  %1949 = vst [vmem:[#allocation8 + $0xe8] sm:$0xff] %v1909_v50   ;;  %1932 = vst [vmem:[#allocation8 + $0x60] sm:$0xff] %v1824_v51   ;;  %v1246_v56 = vsel %vm1111_vm7, %v1047_v44, %v1182_v52  ;;  %v1018_v57 = vadd.f32 %v2268_v40, %v645_v24 }
 0x15d   :  { %v1021_v58 = vadd.f32 %v2039_v29, %v2268_v40  ;;  %v1904_v59 = vpack.c.bf16 %v1246_v56, %v1245_v55  ;;  %v1050_v60 = vadd.f32 %v2268_v40, %v773_v25  ;;  %v1053_v61 = vadd.f32 %v2071_v30, %v2268_v40 }
 0x15e   :  { %v1219_v62 = vsel %vm1084_vm8, %v1020_v45, %v1155_v53  ;;  %v1251_v63 = vsel %vm1116_vm9, %v1052_v49, %v1187_v54  ;;  %vm1082_vm12 = vcmp.ge.f32.partialorder %v1018_v57, 0.0  ;;  %v1153_v2 = vmul.f32 %v2273_v42, %v1018_v57 }
 0x15f   :  { %1948 = vst [vmem:[#allocation8 + $0xe0] sm:$0xff] %v1904_v59   ;;  %vm1085_vm10 = vcmp.ge.f32.partialorder %v1021_v58, 0.0  ;;  %v1156_v0 = vmul.f32 %v2273_v42, %v1021_v58  ;;  %vm1117_vm11 = vcmp.ge.f32.partialorder %v1053_v61, 0.0  ;;  %v1188_v1 = vmul.f32 %v2273_v42, %v1053_v61 }
 0x160   :  { %v1019_v3 = vadd.f32 %v2268_v40, %v648_v34  ;;  %v1051_v4 = vadd.f32 %v2268_v40, %v776_v35  ;;  %vm1114_vm13 = vcmp.ge.f32.partialorder %v1050_v60, 0.0  ;;  %v1185_v5 = vmul.f32 %v2273_v42, %v1050_v60 }
 0x161   :  { %v1220_v6 = vsel %vm1085_vm10, %v1021_v58, %v1156_v0  ;;  %v1252_v7 = vsel %vm1117_vm11, %v1053_v61, %v1188_v1  ;;  %v1217_v12 = vsel %vm1082_vm12, %v1018_v57, %v1153_v2 }
 0x162   :  { %v1839_v8 = vpack.c.bf16 %v1220_v6, %v1219_v62  ;;  %v1919_v9 = vpack.c.bf16 %v1252_v7, %v1251_v63  ;;  %vm1083_vm14 = vcmp.ge.f32.partialorder %v1019_v3, 0.0  ;;  %v1154_v10 = vmul.f32 %v2273_v42, %v1019_v3 }
 0x163   :  { %vm1115_vm15 = vcmp.ge.f32.partialorder %v1051_v4, 0.0  ;;  %v1186_v11 = vmul.f32 %v2273_v42, %v1051_v4  ;;  %v1249_v13 = vsel %vm1114_vm13, %v1050_v60, %v1185_v5 }
 0x164   :  { %1935 = vst [vmem:[#allocation8 + $0x78] sm:$0xff] %v1839_v8   ;;  %1951 = vst [vmem:[#allocation8 + $0xf8] sm:$0xff] %v1919_v9   ;;  %v1218_v40 = vsel %vm1083_vm14, %v1019_v3, %v1154_v10 }
 0x165   :  { %v1834_v14 = vpack.c.bf16 %v1218_v40, %v1217_v12  ;;  %v1250_v15 = vsel %vm1115_vm15, %v1051_v4, %v1186_v11 }
 0x166   :  { %v1914_v16 = vpack.c.bf16 %v1250_v15, %v1249_v13 }
 0x167   :  { %1934 = vst [vmem:[#allocation8 + $0x70] sm:$0xff] %v1834_v14  }
 0x168   :  { %1950 = vst [vmem:[#allocation8 + $0xf0] sm:$0xff] %v1914_v16  }
 0x169   :  { %2188 = shalt.err (!%p2185_p6)
}
 0x16a   :  { %s2189_s20 = scalar_lea.hbm %s2427_s4, 4096 }
 0x16b   :  { %p2190_p7 = scmp.ne.s32.totalorder %s2427_s4, %s2189_s20  ;;  %p2193_p8 = scmp.lt.u32.totalorder %s2189_s20, %s2427_s4 }
 0x16d   :  { %p2195_p9 = pnand %p2193_p8, %p2190_p7 }
 0x16f   :  { %2198 = shalt.err (!%p2195_p9)
}
 0x170   :  { %1584 = dma.vmem_to_hbm [thread:$0]  %s1579_s3, 4096, %s2427_s4, [#allocation5], %s2206_s25, %s2206_s25, %s2207_s26  }
 0x171   :  { %2203 = dma.done.wait [#allocation5], 4096  }
 0x172   :  { %2204 = vsyncadd [#allocation5], 4294963200 }
 0x173   :  { %1588 = vsyncpa [#allocation4], 1 }
 0x174   :  { %1589 = vsyncpa [#allocation7], 1 }
 0x175   :  { %1590 = vsyncpa [#allocation5], 1 }

</bundles_post_ra>
